<compile_context>
chip_gen: v7x
topology: tpu7x:2x2x1
jax: 0.10.0
libtpu: 0.0.40
codegen_flags: <defaults>
</compile_context>

<pallas_src>
import jax
import jax.numpy as jnp
import numpy as np
from jax import lax
from jax.experimental import pallas as pl
from jax.experimental.pallas import tpu as pltpu

# B * 4 * C must equal 16 so that reshape(mean(patch, dim=1), (16,)) is valid,
# exactly as the PyTorch module requires.
B, H, W, C = 1, 16, 16, 4
ATTACK_PT = (2, 3)            # attack_left_up_point
NUM_CLASSES = 10
HIDDEN = 32
LANES = 128                   # packed-buffer / output lane width
NEG_PAD = -1e30               # kills pad lanes under the fused 128-wide softmax

# Static, 8-aligned row offsets inside the packed parameter buffer.
R_W1, R_B1 = 0, 16            # (16, 8)       / (1, 8)
R_W2, R_B2 = 24, 32           # (8, 8)        / (1, 8)
R_W3, R_B3 = 40, 48           # (8, NC)       / (1, NC)   b3 pad lanes = NEG_PAD
R_BT1 = 56                    # (1, HIDDEN)
R_WT2, R_BT2 = 64, 96         # (HIDDEN, NC)  / (1, NC)
PACK_ROWS = 104


def _combined_kernel(xflat_ref, wt1t_ref, pk_ref, out_ref):
    xf = xflat_ref[...]                                              # (1, H*W*C)

    # lambda_layer1 + lambda_layer2 fused: the 4x4xC crop is four contiguous
    # 16-element runs of the flattened NHWC image; mean over the patch-H dim.
    base = ATTACK_PT[0] * W * C + ATTACK_PT[1] * C
    acc = xf[:, base:base + 16]
    for i in range(1, 4):
        off = base + i * W * C
        acc = acc + xf[:, off:off + 16]
    sub = acc * 0.25                                                 # (1, 16)

    # ---- trojan branch: 16 -> 8 -> 8 -> NC MLP (tiny M=1 dots; their MXU
    # latency overlaps with the big target matmul under the LLO scheduler). --
    h = jnp.dot(sub, pk_ref[R_W1:R_W1 + 16, 0:8],
                preferred_element_type=jnp.float32) + pk_ref[R_B1:R_B1 + 1, 0:8]
    h = jnp.maximum(h, 0.0)
    h = jnp.dot(h, pk_ref[R_W2:R_W2 + 8, 0:8],
                preferred_element_type=jnp.float32) + pk_ref[R_B2:R_B2 + 1, 0:8]
    h = jnp.maximum(h, 0.0)
    tro = jnp.dot(h, pk_ref[R_W3:R_W3 + 8, :],
                  preferred_element_type=jnp.float32) + pk_ref[R_B3:R_B3 + 1, :]    # (1, 128)

    # ---- target branch: flattened image -> dense(HIDDEN) -> dense(NC).
    # wt1 is stored transposed (HIDDEN, H*W*C); contract both last dims.
    ht = lax.dot_general(xf, wt1t_ref[...], (((1,), (1,)), ((), ())),
                         preferred_element_type=jnp.float32)                         # (1, HIDDEN)
    ht = jnp.maximum(ht + pk_ref[R_BT1:R_BT1 + 1, 0:HIDDEN], 0.0)
    tgt = jnp.dot(ht, pk_ref[R_WT2:R_WT2 + HIDDEN, :],
                  preferred_element_type=jnp.float32) + pk_ref[R_BT2:R_BT2 + 1, :]   # (1, 128)

    # ---- merge (.add), *10, softmax over all 128 lanes (pad logits ~ -1e31
    # contribute exactly 0 to the sum, so lanes 0..9 are the exact softmax). --
    merged = (tro + tgt) * 10.0
    m = jnp.max(merged, axis=-1, keepdims=True)
    e = jnp.exp(merged - m)
    s = jnp.sum(e, axis=-1, keepdims=True)
    out_ref[...] = e * pl.reciprocal(s, approx=False)


def combined_model_forward(x, packed, wt1_t):
    """x: (B, H, W, C) float32 NHWC; packed/wt1_t from pack_params()."""
    xflat = x.reshape(B, H * W * C)                                  # contiguous, free
    vmem = pl.BlockSpec(memory_space=pltpu.MemorySpace.VMEM)
    out = pl.pallas_call(
        _combined_kernel,
        out_shape=jax.ShapeDtypeStruct((B, LANES), jnp.float32),
        in_specs=[vmem, vmem, vmem],
        out_specs=vmem,
        cost_estimate=pl.CostEstimate(
            flops=2 * (H * W * C) * HIDDEN
                  + 2 * (16 * 8 + 8 * 8 + 8 * LANES + HIDDEN * LANES),
            transcendentals=LANES,
            bytes_accessed=4 * (H * W * C + HIDDEN * H * W * C
                                + PACK_ROWS * LANES + LANES)),
    )(xflat, wt1_t, packed)
    return out[:, :NUM_CLASSES]


def init_params(key):
    """Deterministic PyTorch-Linear-style uniform init; weights stored (in, out)."""
    def lin(k, fan_in, fan_out):
        s = 1.0 / np.sqrt(fan_in)
        kw, kb = jax.random.split(k)
        w = jax.random.uniform(kw, (fan_in, fan_out), jnp.float32, -s, s)
        b = jax.random.uniform(kb, (1, fan_out), jnp.float32, -s, s)
        return w, b

    ks = jax.random.split(key, 5)
    w1, b1 = lin(ks[0], 16, 8)                    # trojan MLP
    w2, b2 = lin(ks[1], 8, 8)
    w3, b3 = lin(ks[2], 8, NUM_CLASSES)
    wt1, bt1 = lin(ks[3], H * W * C, HIDDEN)      # target classifier
    wt2, bt2 = lin(ks[4], HIDDEN, NUM_CLASSES)
    return (w1, b1, w2, b2, w3, b3, wt1, bt1, wt2, bt2)


def pack_params(params):
    """One-time, trace-level packing of the 10 small params into a single
    lane-dense (PACK_ROWS, 128) buffer plus a transposed (HIDDEN, H*W*C) wt1."""
    w1, b1, w2, b2, w3, b3, wt1, bt1, wt2, bt2 = [np.asarray(p, np.float32) for p in params]
    pk = np.zeros((PACK_ROWS, LANES), np.float32)
    pk[R_W1:R_W1 + 16, :8] = w1
    pk[R_B1, :8] = b1[0]
    pk[R_W2:R_W2 + 8, :8] = w2
    pk[R_B2, :8] = b2[0]
    pk[R_W3:R_W3 + 8, :NUM_CLASSES] = w3
    pk[R_B3, :NUM_CLASSES] = b3[0]
    pk[R_B3, NUM_CLASSES:] = NEG_PAD              # pad logits -> -inf-ish under softmax
    pk[R_BT1, :HIDDEN] = bt1[0]
    pk[R_WT2:R_WT2 + HIDDEN, :NUM_CLASSES] = wt2
    pk[R_BT2, :NUM_CLASSES] = bt2[0]
    wt1_t = np.ascontiguousarray(wt1.T)           # (HIDDEN, H*W*C): lane-dense
    return jnp.asarray(pk), jnp.asarray(wt1_t)


def reference_forward(x, params):
    """Pure-JAX replica of the PyTorch Combined_Model.forward semantics."""
    w1, b1, w2, b2, w3, b3, wt1, bt1, wt2, bt2 = params
    r, c = ATTACK_PT
    sub = x[:, r:r + 4, c:c + 4, :]                      # lambda_layer1
    sub = jnp.mean(sub, axis=1).reshape(16)              # lambda_layer2
    h = jax.nn.relu(sub @ w1 + b1[0])
    h = jax.nn.relu(h @ w2 + b2[0])
    tro = h @ w3 + b3[0]                                 # trojan_model_layer -> (NC,)
    xf = x.reshape(B, -1)
    ht = jax.nn.relu(xf @ wt1 + bt1)
    tgt = ht @ wt2 + bt2                                 # target_model_layer -> (B, NC)
    merged = (tro + tgt) * 10.0                          # .add(...) then merge_out (*10)
    return jax.nn.softmax(merged, axis=-1)               # F.softmax (2-D -> dim 1)


if __name__ == "__main__":
    key = jax.random.PRNGKey(0)
    kx, kp = jax.random.split(key)
    x = jax.random.normal(kx, (B, H, W, C), dtype=jnp.float32)
    params = init_params(kp)
    packed, wt1_t = pack_params(params)

    out = combined_model_forward(x, packed, wt1_t)
    out = jax.block_until_ready(out)

    ref = reference_forward(x, params)
    assert out.shape == (B, NUM_CLASSES)
    assert np.allclose(np.asarray(out), np.asarray(ref), rtol=1e-4, atol=1e-5), (out, ref)
    print("KERNEL_OK")
</pallas_src>

<mosaic_0001>
module attributes {stable_mosaic.version = 11 : i64} {
  func.func @_combined_kernel(%arg0: memref<1x1024xf32, #tpu.memory_space<vmem>>, %arg1: memref<32x1024xf32, #tpu.memory_space<vmem>>, %arg2: memref<104x128xf32, #tpu.memory_space<vmem>>, %arg3: memref<1x128xf32, #tpu.memory_space<vmem>>) attributes {dimension_semantics = [], scalar_prefetch = 0 : i64, scratch_operands = 0 : i64, tpu.core_type = #tpu.core_type<tc>} {
    %c0 = arith.constant 0 : index
    %c0_0 = arith.constant 0 : index
    %0 = vector.load %arg0[%c0, %c0_0] : memref<1x1024xf32, #tpu.memory_space<vmem>>, vector<1x1024xf32>
    %1 = vector.extract_strided_slice %0 {offsets = [0, 140], sizes = [1, 16], strides = [1, 1]} : vector<1x1024xf32> to vector<1x16xf32>
    %2 = vector.extract_strided_slice %0 {offsets = [0, 204], sizes = [1, 16], strides = [1, 1]} : vector<1x1024xf32> to vector<1x16xf32>
    %3 = arith.addf %1, %2 : vector<1x16xf32>
    %4 = vector.extract_strided_slice %0 {offsets = [0, 268], sizes = [1, 16], strides = [1, 1]} : vector<1x1024xf32> to vector<1x16xf32>
    %5 = arith.addf %3, %4 : vector<1x16xf32>
    %6 = vector.extract_strided_slice %0 {offsets = [0, 332], sizes = [1, 16], strides = [1, 1]} : vector<1x1024xf32> to vector<1x16xf32>
    %7 = arith.addf %5, %6 : vector<1x16xf32>
    %cst = arith.constant 2.500000e-01 : f32
    %8 = vector.broadcast %cst : f32 to vector<1x16xf32>
    %9 = arith.mulf %7, %8 : vector<1x16xf32>
    %c0_1 = arith.constant 0 : index
    %c0_2 = arith.constant 0 : index
    %10 = vector.load %arg2[%c0_1, %c0_2] : memref<104x128xf32, #tpu.memory_space<vmem>>, vector<16x8xf32>
    %cst_3 = arith.constant dense<0.000000e+00> : vector<1x8xf32>
    %11 = tpu.matmul %9, %10, %cst_3 {dimension_numbers = #tpu.dot_dimension_numbers<[1], [0], [0], [1], [0, 0, 1, 1], [], []>} : vector<1x16xf32>, vector<16x8xf32>, vector<1x8xf32> -> vector<1x8xf32>
    %c16 = arith.constant 16 : index
    %c0_4 = arith.constant 0 : index
    %12 = vector.load %arg2[%c16, %c0_4] : memref<104x128xf32, #tpu.memory_space<vmem>>, vector<1x8xf32>
    %13 = arith.addf %11, %12 : vector<1x8xf32>
    %cst_5 = arith.constant 0.000000e+00 : f32
    %14 = vector.broadcast %cst_5 : f32 to vector<1x8xf32>
    %15 = arith.maximumf %13, %14 : vector<1x8xf32>
    %c24 = arith.constant 24 : index
    %c0_6 = arith.constant 0 : index
    %16 = vector.load %arg2[%c24, %c0_6] : memref<104x128xf32, #tpu.memory_space<vmem>>, vector<8x8xf32>
    %cst_7 = arith.constant dense<0.000000e+00> : vector<1x8xf32>
    %17 = tpu.matmul %15, %16, %cst_7 {dimension_numbers = #tpu.dot_dimension_numbers<[1], [0], [0], [1], [0, 0, 1, 1], [], []>} : vector<1x8xf32>, vector<8x8xf32>, vector<1x8xf32> -> vector<1x8xf32>
    %c32 = arith.constant 32 : index
    %c0_8 = arith.constant 0 : index
    %18 = vector.load %arg2[%c32, %c0_8] : memref<104x128xf32, #tpu.memory_space<vmem>>, vector<1x8xf32>
    %19 = arith.addf %17, %18 : vector<1x8xf32>
    %cst_9 = arith.constant 0.000000e+00 : f32
    %20 = vector.broadcast %cst_9 : f32 to vector<1x8xf32>
    %21 = arith.maximumf %19, %20 : vector<1x8xf32>
    %c40 = arith.constant 40 : index
    %c0_10 = arith.constant 0 : index
    %22 = vector.load %arg2[%c40, %c0_10] : memref<104x128xf32, #tpu.memory_space<vmem>>, vector<8x128xf32>
    %cst_11 = arith.constant dense<0.000000e+00> : vector<1x128xf32>
    %23 = tpu.matmul %21, %22, %cst_11 {dimension_numbers = #tpu.dot_dimension_numbers<[1], [0], [0], [1], [0, 0, 1, 1], [], []>} : vector<1x8xf32>, vector<8x128xf32>, vector<1x128xf32> -> vector<1x128xf32>
    %c48 = arith.constant 48 : index
    %c0_12 = arith.constant 0 : index
    %24 = vector.load %arg2[%c48, %c0_12] : memref<104x128xf32, #tpu.memory_space<vmem>>, vector<1x128xf32>
    %25 = arith.addf %23, %24 : vector<1x128xf32>
    %c0_13 = arith.constant 0 : index
    %c0_14 = arith.constant 0 : index
    %26 = vector.load %arg1[%c0_13, %c0_14] : memref<32x1024xf32, #tpu.memory_space<vmem>>, vector<32x1024xf32>
    %cst_15 = arith.constant dense<0.000000e+00> : vector<1x32xf32>
    %27 = tpu.matmul %0, %26, %cst_15 {dimension_numbers = #tpu.dot_dimension_numbers<[1], [1], [0], [0], [0, 0, 1, 0], [], []>} : vector<1x1024xf32>, vector<32x1024xf32>, vector<1x32xf32> -> vector<1x32xf32>
    %c56 = arith.constant 56 : index
    %c0_16 = arith.constant 0 : index
    %28 = vector.load %arg2[%c56, %c0_16] : memref<104x128xf32, #tpu.memory_space<vmem>>, vector<1x32xf32>
    %29 = arith.addf %27, %28 : vector<1x32xf32>
    %cst_17 = arith.constant 0.000000e+00 : f32
    %30 = vector.broadcast %cst_17 : f32 to vector<1x32xf32>
    %31 = arith.maximumf %29, %30 : vector<1x32xf32>
    %c64 = arith.constant 64 : index
    %c0_18 = arith.constant 0 : index
    %32 = vector.load %arg2[%c64, %c0_18] : memref<104x128xf32, #tpu.memory_space<vmem>>, vector<32x128xf32>
    %cst_19 = arith.constant dense<0.000000e+00> : vector<1x128xf32>
    %33 = tpu.matmul %31, %32, %cst_19 {dimension_numbers = #tpu.dot_dimension_numbers<[1], [0], [0], [1], [0, 0, 1, 1], [], []>} : vector<1x32xf32>, vector<32x128xf32>, vector<1x128xf32> -> vector<1x128xf32>
    %c96 = arith.constant 96 : index
    %c0_20 = arith.constant 0 : index
    %34 = vector.load %arg2[%c96, %c0_20] : memref<104x128xf32, #tpu.memory_space<vmem>>, vector<1x128xf32>
    %35 = arith.addf %33, %34 : vector<1x128xf32>
    %36 = arith.addf %25, %35 : vector<1x128xf32>
    %cst_21 = arith.constant 1.000000e+01 : f32
    %37 = vector.broadcast %cst_21 : f32 to vector<1x128xf32>
    %38 = arith.mulf %36, %37 : vector<1x128xf32>
    %cst_22 = arith.constant dense<0xFF800000> : vector<1xf32>
    %39 = vector.multi_reduction <maximumf>, %38, %cst_22 [1] : vector<1x128xf32> to vector<1xf32>
    %40 = vector.shape_cast %39 : vector<1xf32> to vector<1x1xf32>
    %41 = vector.broadcast %40 : vector<1x1xf32> to vector<1x128xf32>
    %42 = arith.subf %38, %41 : vector<1x128xf32>
    %43 = math.exp %42 : vector<1x128xf32>
    %cst_23 = arith.constant dense<0.000000e+00> : vector<1xf32>
    %44 = vector.multi_reduction <add>, %43, %cst_23 [1] : vector<1x128xf32> to vector<1xf32>
    %45 = vector.shape_cast %44 : vector<1xf32> to vector<1x1xf32>
    %46 = tpu.reciprocal %45 : vector<1x1xf32> -> vector<1x1xf32>
    %47 = vector.broadcast %46 : vector<1x1xf32> to vector<1x128xf32>
    %48 = arith.mulf %43, %47 : vector<1x128xf32>
    %c0_24 = arith.constant 0 : index
    %c0_25 = arith.constant 0 : index
    %49 = vector.load %arg3[%c0_24, %c0_25] : memref<1x128xf32, #tpu.memory_space<vmem>>, vector<1x128xf32>
    tpu.vector_store %arg3[%c0_24, %c0_25], %48 {strides = array<i32>} : memref<1x128xf32, #tpu.memory_space<vmem>>, vector<1x128xf32>,
    return
  }
}

</mosaic_0001>

<bundles_post_ra>
// kernel: tpu_custom_call.1
= control target key start
LH: loop header
LB: loop body
LE: loop exit
PB: predicated region body
PF: predicated region fallthrough
CT: control target
= control target key end

     0   :  { %8 = vsyncpa [#allocation3], 0  ;;  %s1090_s0 = inlined_call_operand.hbm [shape: f32[1,1024], index: 0, kind: input, shape index: {}]   ;;  %s1091_s1 = inlined_call_operand.hbm [shape: f32[32,1024], index: 1, kind: input, shape index: {}]   ;;  %s1092_s2 = inlined_call_operand.hbm [shape: f32[104,128], index: 2, kind: input, shape index: {}]   ;;  %s1093_s3 = inlined_call_operand.hbm [shape: f32[1,128], index: 3, kind: output, shape index: {}]  }
   0x1   :  { %9 = vsyncpa [#allocation6], 0 }
   0x2   :  { %10 = vsyncpa [#allocation4], 0  ;;  %s972_s12 = smov [#allocation5]   ;;  %s878_s16 = scalar_lea.hbm %s1091_s1, 4096 }
   0x3   :  { %s26_s13 = sshll.u32 %s972_s12, 4  ;;  %p879_p0 = scmp.ne.s32.totalorder %s1091_s1, %s878_s16  ;;  %s27_s13 = int_to_ptr.vmem [resolvable:$true] %s26_s13 }
   0x4   :  { %p882_p1 = scmp.lt.u32.totalorder %s878_s16, %s1091_s1 }
   0x6   :  { %p884_p2 = pnand %p882_p1, %p879_p0 }
   0x8   :  { %887 = shalt.err (!%p884_p2)
}
   0x9   :  { %s888_s21 = scalar_lea.vmem %s27_s13, 4096  ;;  %p893_p4 = scmp.lt.s32.totalorder %s27_s13, %s27_s13 }
   0xa   :  { %p889_p3 = scmp.ne.s32.totalorder %s27_s13, %s888_s21  ;;  %p894_p5 = scmp.lt.s32.totalorder %s888_s21, %s888_s21 }
   0xc   :  { %p895_p6 = por %p894_p5, %p893_p4 }
   0xe   :  { %p896_p7 = pnand %p895_p6, %p889_p3 }
  0x10   :  { %899 = shalt.err (!%p896_p7)
}
  0x11   :  { %s973_s22 = smov 1024   ;;  %s974_s23 = smov 64  }
  0x12   :  { %32 = dma.hbm_to_vmem [thread:$0]  %s1091_s1, 4096, %s27_s13, [#allocation6], %s973_s22, %s973_s22, %s974_s23  }
  0x13   :  { %s975_s26 = smov [#allocation2]   ;;  %s976_s28 = smov [#allocation7]  }
  0x14   :  { %s17_s27 = sshll.u32 %s975_s26, 4  ;;  %s38_s29 = sshll.u32 %s976_s28, 4  ;;  %s18_s27 = int_to_ptr.vmem [resolvable:$true] %s17_s27  ;;  %s39_s29 = int_to_ptr.vmem [resolvable:$true] %s38_s29 }
  0x15   :  { %s900_s5 = scalar_lea.hbm %s1090_s0, 128 }
  0x16   :  { %p901_p8 = scmp.ne.s32.totalorder %s1090_s0, %s900_s5  ;;  %p904_p9 = scmp.lt.u32.totalorder %s900_s5, %s1090_s0 }
  0x18   :  { %p906_p10 = pnand %p904_p9, %p901_p8 }
  0x1a   :  { %909 = shalt.err (!%p906_p10)
}
  0x1b   :  { %s910_s1 = scalar_lea.vmem %s18_s27, 128  ;;  %p915_p12 = scmp.lt.s32.totalorder %s18_s27, %s18_s27 }
  0x1c   :  { %p911_p11 = scmp.ne.s32.totalorder %s18_s27, %s910_s1  ;;  %p916_p13 = scmp.lt.s32.totalorder %s910_s1, %s910_s1 }
  0x1e   :  { %p917_p0 = por %p916_p13, %p915_p12 }
  0x20   :  { %p918_p1 = pnand %p917_p0, %p911_p11 }
  0x22   :  { %921 = shalt.err (!%p918_p1)
}
  0x23   :  { %20 = dma.hbm_to_vmem [thread:$0]  %s1090_s0, 128, %s18_s27, [#allocation3]  }
  0x24   :  { %s922_s14 = scalar_lea.hbm %s1092_s2, 1664 }
  0x25   :  { %p923_p2 = scmp.ne.s32.totalorder %s1092_s2, %s922_s14  ;;  %p926_p3 = scmp.lt.u32.totalorder %s922_s14, %s1092_s2 }
  0x27   :  { %p928_p4 = pnand %p926_p3, %p923_p2 }
  0x29   :  { %931 = shalt.err (!%p928_p4)
}
  0x2a   :  { %s932_s19 = scalar_lea.vmem %s39_s29, 1664  ;;  %p937_p6 = scmp.lt.s32.totalorder %s39_s29, %s39_s29 }
  0x2b   :  { %p933_p5 = scmp.ne.s32.totalorder %s39_s29, %s932_s19  ;;  %p938_p7 = scmp.lt.s32.totalorder %s932_s19, %s932_s19 }
  0x2d   :  { %p939_p8 = por %p938_p7, %p937_p6 }
  0x2f   :  { %p940_p9 = pnand %p939_p8, %p933_p5 }
  0x31   :  { %943 = shalt.err (!%p940_p9)
}
  0x32   :  { %s977_s0 = smov 128   ;;  %s978_s20 = smov 8  }
  0x33   :  { %44 = dma.hbm_to_vmem [thread:$0]  %s1092_s2, 1664, %s39_s29, [#allocation6], %s977_s0, %s977_s0, %s978_s20  }
  0x34   :  { %966 = dma.done.wait [#allocation3], 128  }
  0x35   :  { %967 = vsyncadd [#allocation3], 4294967168 }
  0x36   :  { %968 = dma.done.wait [#allocation6], 5760  }
  0x37   :  { %969 = vsyncadd [#allocation6], 4294961536  ;;  %v979_v0 = vmov 0.0|0.0   ;;  %v1042_v1 = vld [vmem:[#allocation2] sm:$0xff]  ;;  %v72_v2 = vld [vmem:[#allocation7] sm:$0xff]  ;;  %s980_s23 = smov 116   ;;  %v335_v35 = vlaneseq }
  0x38   :  { %810 = vmatprep.subr.bf16.mxu0 %v979_v0  ;;  %v73_v3 = vld [vmem:[#allocation7 + $0x8] sm:$0xff]  ;;  %56 = vrot.lane.b32.xlu0 %v1042_v1, %s980_s23  ;;  %vm981_vm0 = vmmov 0   ;;  %v982_v5 = vmov 0.0   ;;  %s983_s2 = smov 52   ;;  %vm75_vm1 = vcmask 130048   ;;  %v150_v16 = vld [vmem:[#allocation7 + $0x18] sm:$0xff] }
  0x39   :  { %v811_v4 = vpack.c.bf16 %v73_v3, %v72_v2  ;;  %786 = vmatprep.mubr.msk.f32.mxu0 %vm981_vm0, %v982_v5  ;;  %794 = vmatprep.subr.mxu1 %v982_v5  ;;  %v307_v17 = vld [vmem:[#allocation5 + $0x28] sm:$0xff]  ;;  %v74_v21 = vld [vmem:[#allocation7 + $0x10] sm:$0x1]  ;;  %v306_v22 = vld [vmem:[#allocation5 + $0x20] sm:$0xff]  ;;  %vm152_vm2 = vcmask 64512   ;;  %v1055_v38 = vshrl.u32 %v335_v35, 7 }
  0x3a   :  { %796 = vmatprep.mubr.msk.f32.mxu1 %vm981_vm0, %v982_v5  ;;  %v315_v18 = vld [vmem:[#allocation5 + $0x68] sm:$0xff]  ;;  %v314_v23 = vld [vmem:[#allocation5 + $0x60] sm:$0xff]  ;;  %v309_v41 = vld [vmem:[#allocation5 + $0x38] sm:$0xff]  ;;  %vm661_vm3 = vcmask 261120   ;;  %vm737_vm4 = vcmask 1040384   ;;  %s984_s24 = smov [#allocation8]  }
  0x3b   :  { %812 = vmatpush3.bf16.msra.mxu0 %v811_v4  ;;  %v829_v19 = vpack.c.bf16 %v315_v18, %v307_v17  ;;  %v227_v20 = vld [vmem:[#allocation7 + $0x28] sm:$0xff]  ;;  %v831_v29 = vpack.c.bf16 %v314_v23, %v306_v22  ;;  %v322_v32 = vld [vmem:[#allocation5 + $0xa0] sm:$0xff]  ;;  %v357_v40 = vsub.s32 5, %v1055_v38  ;;  %v317_v42 = vld [vmem:[#allocation5 + $0x78] sm:$0xff]  ;;  %v353_v43 = vsub.s32 4, %v1055_v38  ;;  %s756_s25 = sshll.u32 %s984_s24, 4  ;;  %s757_s25 = int_to_ptr.vmem [resolvable:$true] %s756_s25 }
  0x3c   :  { %789 = vmatprep.subr.mxu0 %v982_v5  ;;  %60 = vrot.lane.b32.xlu0 %v1042_v1, %s983_s2  ;;  %v323_v25 = vld [vmem:[#allocation5 + $0xa8] sm:$0xff]  ;;  %v330_v33 = vld [vmem:[#allocation5 + $0xe0] sm:$0xff]  ;;  %v837_v45 = vpack.c.bf16 %v317_v42, %v309_v41  ;;  %v308_v46 = vld [vmem:[#allocation5 + $0x30] sm:$0xff]  ;;  %v365_v56 = vsub.s32 7, %v1055_v38  ;;  %v361_v57 = vsub.s32 6, %v1055_v38  ;;  %v341_v61 = vsub.s32 1, %v1055_v38  ;;  %p949_p11 = scmp.lt.s32.totalorder %s757_s25, %s757_s25 }
  0x3d   :  { %795 = vmatpush3.msra.mxu1 %v227_v20  ;;  %v331_v26 = vld [vmem:[#allocation5 + $0xe8] sm:$0xff]  ;;  %v835_v34 = vpack.c.bf16 %v330_v33, %v322_v32  ;;  %v358_v44 = vrot.slane %v1042_v1, %v357_v40  ;;  %v316_v47 = vld [vmem:[#allocation5 + $0x70] sm:$0xff]  ;;  %v354_v48 = vrot.slane %v1042_v1, %v353_v43  ;;  %v325_v50 = vld [vmem:[#allocation5 + $0xb8] sm:$0xff]  ;;  %v337_v18 = vsub.s32 0, %v1055_v38  ;;  %s944_s26 = scalar_lea.vmem %s757_s25, 16  ;;  %s948_s27 = scalar_lea.vmem %s757_s25, 32 }
  0x3e   :  { %v833_v31 = vpack.c.bf16 %v331_v26, %v323_v25  ;;  %v303_v36 = vld [vmem:[#allocation5 + $0x8] sm:$0xff]  ;;  %v839_v49 = vpack.c.bf16 %v316_v47, %v308_v46  ;;  %v333_v51 = vld [vmem:[#allocation5 + $0xf8] sm:$0xff]  ;;  %v324_v53 = vld [vmem:[#allocation5 + $0xb0] sm:$0xff]  ;;  %v366_v58 = vrot.slane %v1042_v1, %v365_v56  ;;  %v362_v59 = vrot.slane %v1042_v1, %v361_v57  ;;  %p945_p10 = scmp.ne.s32.totalorder %s757_s25, %s944_s26  ;;  %p950_p12 = scmp.lt.s32.totalorder %s948_s27, %s944_s26 }
  0x3f   :  { %v311_v37 = vld [vmem:[#allocation5 + $0x48] sm:$0xff]  ;;  %v841_v52 = vpack.c.bf16 %v333_v51, %v325_v50  ;;  %v332_v54 = vld [vmem:[#allocation5 + $0xf0] sm:$0xff]  ;;  %v151_v60 = vld [vmem:[#allocation7 + $0x20] sm:$0x1] }
  0x40   :  { %v813_v39 = vpack.c.bf16 %v311_v37, %v303_v36  ;;  %v843_v55 = vpack.c.bf16 %v332_v54, %v324_v53  ;;  %v302_v62 = vld [vmem:[#allocation5] sm:$0xff]  ;;  %v319_v3 = vld [vmem:[#allocation5 + $0x88] sm:$0xff]  ;;  %v304_v20 = vld [vmem:[#allocation5 + $0x10] sm:$0xff]  ;;  %p951_p13 = por %p950_p12, %p949_p11 }
  0x41   :  { %v310_v63 = vld [vmem:[#allocation5 + $0x40] sm:$0xff]  ;;  %v327_v4 = vld [vmem:[#allocation5 + $0xc8] sm:$0xff]  ;;  %v321_v22 = vld [vmem:[#allocation5 + $0x98] sm:$0xff] }
  0x42   :  { %814 = vmatprep.subr.bf16.mxu1 %v813_v39  ;;  %v329_v23 = vld [vmem:[#allocation5 + $0xd8] sm:$0xff]  ;;  %v656_v35 = vld [vmem:[#allocation7 + $0x40] sm:$0xff]  ;;  %v657_v36 = vld [vmem:[#allocation7 + $0x48] sm:$0xff]  ;;  %p952_p0 = pnand %p951_p13, %p945_p10 }
  0x43   :  { %v846_v37 = vpack.c.bf16 %v657_v36, %v656_v35  ;;  %v658_v39 = vld [vmem:[#allocation7 + $0x50] sm:$0xff]  ;;  %v659_v40 = vld [vmem:[#allocation7 + $0x58] sm:$0xff]  ;;  %v660_v46 = vld [vmem:[#allocation7 + $0x60] sm:$0x1] }
  0x44   :  { %v334_v41 = vld [vmem:[#allocation7 + $0x38] sm:$0x1] }
  0xaa   :  { %v57_v6 = vpop.permute.xlu0 %56 }
  0xab   :  { %v58_v8 = vrot.slane %v57_v6, 1  ;;  %v65_v10 = vrot.slane %v57_v6, 2 }
  0xae   :  { %v61_v7 = vpop.permute.xlu0 %60 }
  0xaf   :  { %v62_v9 = vrot.slane %v61_v7, 1  ;;  %v68_v13 = vrot.slane %v61_v7, 2 }
  0xb1   :  { %v64_v11 = vadd.f32 %v62_v9, %v58_v8  ;;  %v815_v8 = vpack.c.bf16 %v310_v63, %v302_v62  ;;  %v342_v9 = vrot.slane %v1042_v1, %v341_v61 }
  0xb3   :  { %v67_v12 = vadd.f32 %v65_v10, %v64_v11  ;;  %v817_v11 = vpack.c.bf16 %v327_v4, %v319_v3 }
  0xb5   :  { %v70_v14 = vadd.f32 %v68_v13, %v67_v12  ;;  %v318_v12 = vld [vmem:[#allocation5 + $0x80] sm:$0xff] }
  0xb6   :  { %v326_v13 = vld [vmem:[#allocation5 + $0xc0] sm:$0xff] }
  0xb7   :  { %v71_v15 = vmul.f32 0.25, %v70_v14  ;;  %v305_v14 = vld [vmem:[#allocation5 + $0x18] sm:$0xff] }
  0xb9   :  { %787 = vmatmul.mubr.msk.f32.vlgmr.msra.gmra.mrb[0].mxu0 %vm75_vm1, %v71_v15  ;;  %v313_v15 = vld [vmem:[#allocation5 + $0x58] sm:$0xff] }
  0xba   :  { %791 = vmatprep.mubr.msk.f32.mxu0 %vm981_vm0, %v982_v5  ;;  %790 = vmatpush3.msra.mxu0 %v150_v16  ;;  %v819_v16 = vpack.c.bf16 %v326_v13, %v318_v12  ;;  %v821_v17 = vpack.c.bf16 %v313_v15, %v305_v14 }
  0xbb   :  { %830 = vmatprep.subr.bf16.mxu0 %v829_v19  ;;  %v349_v19 = vsub.s32 3, %v1055_v38 }
  0xbd   :  { %v350_v26 = vrot.slane %v1042_v1, %v349_v19 }
 0x18c   :  { %v145_v24 = vpop.f32.mrb[0].mxu0 }
 0x18d   :  { %v146_v27 = vadd.f32 %v145_v24, %v74_v21  ;;  %v788_v28 = vpop.f32.mrb[1].mxu0  ;;  %v312_v21 = vld [vmem:[#allocation5 + $0x50] sm:$0xff]  ;;  %v338_v24 = vrot.slane %v1042_v1, %v337_v18 }
 0x18e   :  { %v823_v25 = vpack.c.bf16 %v312_v21, %v304_v20  ;;  %v320_v28 = vld [vmem:[#allocation5 + $0x90] sm:$0xff] }
 0x18f   :  { %v149_v30 = vmax.f32 %v146_v27, 0.0  ;;  %v825_v27 = vpack.c.bf16 %v329_v23, %v321_v22 }
 0x191   :  { %792 = vmatmul.mubr.msk.f32.vlgmr.msra.gmra.mrb[2].mxu0 %vm152_vm2, %v149_v30 }
 0x192   :  { %832 = vmatpush1.bf16.xpose.msra.mxu0 %v831_v29  ;;  %579 = vmatprep.mubr.f32.mxu0 %v358_v44  ;;  %v328_v29 = vld [vmem:[#allocation5 + $0xd0] sm:$0xff] }
 0x193   :  { %834 = vmatprep.subr.bf16.mxu0 %v833_v31  ;;  %v827_v30 = vpack.c.bf16 %v328_v29, %v320_v28  ;;  %v345_v31 = vsub.s32 2, %v1055_v38  ;;  %v849_v38 = vpack.c.bf16 %v659_v40, %v658_v39 }
 0x195   :  { %v346_v32 = vrot.slane %v1042_v1, %v345_v31 }
 0x19a   :  { %836 = vmatpush1.bf16.xpose.msra.mxu0 %v835_v34 }
 0x19b   :  { %838 = vmatprep.subr.bf16.mxu0 %v837_v45 }
 0x1a1   :  { %580 = vmatmul.mubr.f32.vlgmr.msra.gmra.mrb[4].mxu0 %v354_v48 }
 0x1a2   :  { %840 = vmatpush1.bf16.xpose.msra.mxu0 %v839_v49  ;;  %649 = vmatprep.mubr.f32.mxu0 %v366_v58 }
 0x1a3   :  { %842 = vmatprep.subr.bf16.mxu0 %v841_v52 }
 0x1aa   :  { %844 = vmatpush1.bf16.xpose.msra.mxu0 %v843_v55 }
 0x1b1   :  { %650 = vmatmul.mubr.f32.vlgmr.msra.gmra.mrb[4].mxu0 %v362_v59 }
 0x264   :  { %v222_v2 = vpop.f32.mrb[2].mxu0 }
 0x265   :  { %v223_v6 = vadd.f32 %v222_v2, %v151_v60  ;;  %v793_v7 = vpop.f32.mrb[3].mxu0 }
 0x267   :  { %v226_v10 = vmax.f32 %v223_v6, 0.0 }
 0x269   :  { %797 = vmatmul.mubr.msk.f32.vlgmr.msra.gmra.mrb[0].mxu1 %vm152_vm2, %v226_v10 }
 0x26a   :  { %816 = vmatpush1.bf16.xpose.msra.mxu1 %v815_v8  ;;  %439 = vmatprep.mubr.f32.mxu1 %v342_v9 }
 0x26b   :  { %818 = vmatprep.subr.bf16.mxu1 %v817_v11 }
 0x272   :  { %820 = vmatpush1.bf16.xpose.msra.mxu1 %v819_v16 }
 0x273   :  { %822 = vmatprep.subr.bf16.mxu1 %v821_v17 }
 0x279   :  { %440 = vmatmul.mubr.f32.vlgmr.msra.gmra.mrb[2].mxu1 %v338_v24 }
 0x27a   :  { %824 = vmatpush1.bf16.xpose.msra.mxu1 %v823_v25  ;;  %509 = vmatprep.mubr.f32.mxu1 %v350_v26 }
 0x27b   :  { %826 = vmatprep.subr.bf16.mxu1 %v825_v27 }
 0x282   :  { %828 = vmatpush1.bf16.xpose.msra.mxu1 %v827_v30 }
 0x283   :  { %845 = vmatprep.subr.bf16.mxu1 %v979_v0 }
 0x284   :  { %v651_v33 = vpop.f32.mrb[4].mxu0 }
 0x285   :  { %v653_v34 = vpop.f32.mrb[5].mxu0 }
 0x289   :  { %510 = vmatmul.mubr.f32.vlgmr.msra.gmra.mrb[2].mxu1 %v346_v32 }
 0x28a   :  { %807 = vmatprep.mubr.msk.f32.mxu1 %vm981_vm0, %v982_v5  ;;  %847 = vmatpush3.bf16.msra.mxu1 %v846_v37  ;;  %v228_v5 = vld [vmem:[#allocation7 + $0x30] sm:$0x1] }
 0x28b   :  { %848 = vmatprep.subr.bf16.mxu1 %v979_v0  ;;  %v851_v47 = vadd.f32 %v660_v46, %v228_v5 }
 0x28e   :  { %850 = vmatpush3.bf16.msra.mxu1 %v849_v38 }
 0x35c   :  { %v511_v42 = vpop.f32.mrb[2].mxu1 }
 0x35d   :  { %v853_v43 = vadd.f32 %v511_v42, %v334_v41  ;;  %v513_v1 = vpop.f32.mrb[3].mxu1 }
 0x35f   :  { %v854_v44 = vadd.f32 %v853_v43, %v651_v33 }
 0x361   :  { %v655_v45 = vmax.f32 %v854_v44, 0.0 }
 0x363   :  { %808 = vmatmul.mubr.msk.f32.vlgmr.msra.gmra.mrb[0].mxu1 %vm661_vm3, %v655_v45 }
 0x436   :  { %v731_v48 = vpop.f32.mrb[0].mxu1 }
 0x437   :  { %v852_v49 = vadd.f32 %v851_v47, %v731_v48  ;;  %v809_v50 = vpop.f32.mrb[1].mxu1 }
 0x439   :  { %v736_v0 = vmul.f32 10.0, %v852_v49 }
 0x43b   :  { %v738_v51 = vsel %vm737_vm4, %v736_v0, -inf }
 0x43c   :  { %739 = vmax.xlane.f32.xlu1 %v738_v51 }
 0x4c9   :  { %v740_v52 = vpop.xlane.xlu1 %739 }
 0x4ca   :  { %v741_v53 = vsub.f32 %v736_v0, %v740_v52 }
 0x4cc   :  { %v742_v54 = vmul.f32 1.442695, %v741_v53 }
 0x4ce   :  { %874 = vpow2.f32 %v742_v54 }
 0x4d8   :  { %v875_v55 = vpop.eup %874 }
 0x4d9   :  { %v744_v56 = vsel %vm737_vm4, %v875_v55, 0.0 }
 0x4da   :  { %745 = vadd.xlane.f32.xlu1 %v744_v56 }
 0x567   :  { %v746_v57 = vpop.xlane.xlu1 %745 }
 0x568   :  { %876 = vrcp.f32 %v746_v57 }
 0x572   :  { %v877_v58 = vpop.eup %876 }
 0x573   :  { %v748_v59 = vmul.f32 %v877_v58, %v875_v55 }
 0x575   :  { %749 = vst [vmem:[#allocation8] sm:$0x1] %v748_v59 }
 0x576   :  { %955 = shalt.err (!%p952_p0)
}
 0x577   :  { %s956_s30 = scalar_lea.hbm %s1093_s3, 16 }
 0x578   :  { %p957_p1 = scmp.ne.s32.totalorder %s1093_s3, %s956_s30  ;;  %p960_p2 = scmp.lt.u32.totalorder %s956_s30, %s1093_s3 }
 0x57a   :  { %p962_p3 = pnand %p960_p2, %p957_p1 }
 0x57c   :  { %965 = shalt.err (!%p962_p3)
}
 0x57d   :  { %759 = dma.vmem_to_hbm [thread:$0]  %s757_s25, 16, %s1093_s3, [#allocation4]  }
 0x57e   :  { %970 = dma.done.wait [#allocation4], 16  }
 0x57f   :  { %971 = vsyncadd [#allocation4], 4294967280 }
 0x580   :  { %763 = vsyncpa [#allocation3], 1 }
 0x581   :  { %764 = vsyncpa [#allocation6], 1 }
 0x582   :  { %765 = vsyncpa [#allocation4], 1 }

</bundles_post_ra>
